<compile_context>
chip_gen: v6e
topology: v6e:2x2x1
jax: 0.10.0
libtpu: 0.0.40
codegen_flags: <defaults>
</compile_context>

<pallas_src>
import functools

import jax
import jax.numpy as jnp
from jax.experimental import pallas as pl
from jax.experimental.pallas import tpu as pltpu

LABEL_DIM = 100  # hard-coded "+100" in the PyTorch module
LANE = 128


def _round_up(x, m):
    return (x + m - 1) // m * m


def _decoder_step(x, h_prev, wf_ref, whh_ref, wph_ref, bhn_ref, *, h):
    """One GRU + projection step on VMEM-resident operands.

    x      : (B, Kp) bf16; lane K holds 1.0 (bias column), rest zero-padded
    h_prev : (B, H)  f32
    returns: (pred (B,H) f32, h_new (B,H) f32)
    """
    # One wide MXU push: r|z|n input gates + enc/inp half of the projection
    # (+ all foldable biases via the ones column of x).
    fused = jnp.dot(x, wf_ref[...], preferred_element_type=jnp.float32)       # (B, Np)
    gh = jnp.dot(h_prev.astype(jnp.bfloat16), whh_ref[...],
                 preferred_element_type=jnp.float32) + bhn_ref[...]           # (B, Np)

    r = jax.nn.sigmoid(fused[:, 0:h] + gh[:, 0:h])
    z = jax.nn.sigmoid(fused[:, h:2 * h] + gh[:, h:2 * h])
    n = jnp.tanh(fused[:, 2 * h:3 * h] + r * gh[:, 2 * h:3 * h])
    h_new = (1.0 - z) * n + z * h_prev

    pred = (fused[:, 3 * h:4 * h]
            + jnp.dot(h_new.astype(jnp.bfloat16), wph_ref[...],
                      preferred_element_type=jnp.float32))
    return pred, h_new


def _decoder_loop_kernel(x_ref, h0_ref, wf_ref, whh_ref, wph_ref, bhn_ref,
                         pred_ref, hout_ref, hcarry, *, h):
    t = pl.program_id(0)

    @pl.when(t == 0)
    def _():
        hcarry[...] = h0_ref[...]

    pred, h_new = _decoder_step(x_ref[0], hcarry[...],
                                wf_ref, whh_ref, wph_ref, bhn_ref, h=h)

    pred_ref[0, :, 0:h] = pred
    hcarry[...] = h_new
    hout_ref[...] = h_new


def prepare_params(params, enc_hidden_size, dec_hidden_size):
    """One-time weight re-layout: transpose, pack gates into one 128-lane tile,
    append bias row (used via a ones column on x), cast matmul operands to bf16."""
    E, H = enc_hidden_size, dec_hidden_size
    # proj_out in-dim is 2H+100; concat [enc, h, inp] only matches if E == H.
    assert E == H, "enc_hidden_size must equal dec_hidden_size (proj_out arithmetic)"
    K = E + LABEL_DIM                      # rnn-input width
    Kp = _round_up(K + 1, 16)              # +1 ones/bias column; bf16 sublane align
    Np = max(LANE, _round_up(4 * H, LANE))  # packed r|z|n|proj lane width

    w_ih, b_ih = params["w_ih"], params["b_ih"]      # (3H, K), (3H,)
    w_hh, b_hh = params["w_hh"], params["b_hh"]      # (3H, H), (3H,)
    w_p, b_p = params["w_proj"], params["b_proj"]    # (H, 2H+100), (H,)

    wih_t = w_ih.T                                   # (K, 3H)
    whh_t = w_hh.T                                   # (H, 3H)

    wf = jnp.zeros((Kp, Np), jnp.float32)
    for g in range(3):
        wf = wf.at[:K, g * H:(g + 1) * H].set(wih_t[:, g * H:(g + 1) * H])
    # enc/inp half of the projection: rows 0:E <- wp_enc, rows E:K <- wp_inp.
    wf = wf.at[:E, 3 * H:4 * H].set(w_p[:, :E].T)
    wf = wf.at[E:K, 3 * H:4 * H].set(w_p[:, E + H:].T)
    # bias row (picked up by the ones column appended to x):
    wf = wf.at[K, 0:H].set(b_ih[0:H] + b_hh[0:H])                # r
    wf = wf.at[K, H:2 * H].set(b_ih[H:2 * H] + b_hh[H:2 * H])    # z
    wf = wf.at[K, 2 * H:3 * H].set(b_ih[2 * H:3 * H])            # n (input half)
    wf = wf.at[K, 3 * H:4 * H].set(b_p)                          # projection bias

    whh = jnp.zeros((H, Np), jnp.float32)
    for g in range(3):
        whh = whh.at[:, g * H:(g + 1) * H].set(whh_t[:, g * H:(g + 1) * H])

    wph = w_p[:, E:E + H].T                                      # (H, H)

    # b_hh_n cannot be folded (it sits inside r * (...)); keep one f32 bias ref.
    bhn = jnp.zeros((1, Np), jnp.float32).at[0, 2 * H:3 * H].set(b_hh[2 * H:3 * H])

    return {
        "wf": wf.astype(jnp.bfloat16),
        "whh": whh.astype(jnp.bfloat16),
        "wph": wph.astype(jnp.bfloat16),
        "bhn": bhn,
        "E": E, "H": H, "K": K, "Kp": Kp, "Np": Np,
    }


def _pack_inputs(inputs, encoder_outputs, prep):
    """inputs: (T, B, 100); encoder_outputs: (B, E). Returns (T, B, Kp) bf16."""
    T, B, _ = inputs.shape
    E, K, Kp = prep["E"], prep["K"], prep["Kp"]
    x = jnp.zeros((T, B, Kp), jnp.float32)
    x = x.at[:, :, :E].set(jnp.broadcast_to(encoder_outputs[None], (T, B, E)))
    x = x.at[:, :, E:K].set(inputs)
    x = x.at[:, :, K].set(1.0)           # ones column -> folded biases
    return x.astype(jnp.bfloat16)


def decoder_decode(inputs, hidden0, encoder_outputs, prep):
    """Teacher-forced T-step decode inside ONE pallas_call.

    Weights are fetched HBM->VMEM once (constant index_maps) and stay
    resident; the hidden state is carried across grid steps in VMEM scratch.

    inputs : (T, B, 100) per-step decoder inputs
    hidden0: (B, H)
    returns: (preds (T, B, H), hidden_T (B, H))
    """
    T, B, _ = inputs.shape
    H, Kp, Np = prep["H"], prep["Kp"], prep["Np"]

    x_all = _pack_inputs(inputs, encoder_outputs, prep)
    h0 = hidden0.astype(jnp.float32)

    kernel = functools.partial(_decoder_loop_kernel, h=H)
    const = lambda t: (0, 0)

    preds, h_t = pl.pallas_call(
        kernel,
        out_shape=(
            jax.ShapeDtypeStruct((T, B, Np), jnp.float32),
            jax.ShapeDtypeStruct((B, H), jnp.float32),
        ),
        grid_spec=pltpu.PrefetchScalarGridSpec(
            num_scalar_prefetch=0,
            grid=(T,),
            in_specs=[
                pl.BlockSpec((1, B, Kp), lambda t: (t, 0, 0)),   # per-step input
                pl.BlockSpec((B, H), const),                     # h0       (resident)
                pl.BlockSpec((Kp, Np), const),                   # wf       (resident)
                pl.BlockSpec((H, Np), const),                    # whh      (resident)
                pl.BlockSpec((H, H), const),                     # wph      (resident)
                pl.BlockSpec((1, Np), const),                    # bhn      (resident)
            ],
            out_specs=[
                pl.BlockSpec((1, B, Np), lambda t: (t, 0, 0)),   # per-step pred slab
                pl.BlockSpec((B, H), const),                     # final hidden
            ],
            scratch_shapes=[pltpu.VMEM((B, H), jnp.float32)],    # hidden carry
        ),
        compiler_params=pltpu.CompilerParams(
            dimension_semantics=("arbitrary",)),                 # sequential state carry
    )(x_all, h0, prep["wf"], prep["whh"], prep["wph"], prep["bhn"])

    return preds[:, :, :H], h_t


def decoder_forward(inp, hidden, encoder_outputs, prep):
    """Single-step forward matching the PyTorch module. Returns (pred, hidden_new)."""
    preds, h_new = decoder_decode(inp[None], hidden, encoder_outputs, prep)
    return preds[0], h_new


def _reference_forward(inp, hidden, encoder_outputs, params):
    """Pure-JAX (f32) reference matching PyTorch GRUCell + Linear semantics."""
    x = jnp.concatenate([encoder_outputs, inp], axis=-1)
    H = hidden.shape[-1]
    gi = x @ params["w_ih"].T + params["b_ih"]
    gh = hidden @ params["w_hh"].T + params["b_hh"]
    r = jax.nn.sigmoid(gi[:, :H] + gh[:, :H])
    z = jax.nn.sigmoid(gi[:, H:2 * H] + gh[:, H:2 * H])
    n = jnp.tanh(gi[:, 2 * H:] + r * gh[:, 2 * H:])
    h_new = (1.0 - z) * n + z * hidden
    cat = jnp.concatenate([encoder_outputs, h_new, inp], axis=-1)
    pred = cat @ params["w_proj"].T + params["b_proj"]
    return pred, h_new


def init_params(key, enc_hidden_size, dec_hidden_size):
    H = dec_hidden_size
    in_dim = enc_hidden_size + LABEL_DIM
    proj_in = dec_hidden_size * 2 + LABEL_DIM
    ks = jax.random.split(key, 6)
    k_gru = 1.0 / jnp.sqrt(H)
    k_lin = 1.0 / jnp.sqrt(proj_in)
    return {
        "w_ih": jax.random.uniform(ks[0], (3 * H, in_dim), jnp.float32, -k_gru, k_gru),
        "b_ih": jax.random.uniform(ks[1], (3 * H,), jnp.float32, -k_gru, k_gru),
        "w_hh": jax.random.uniform(ks[2], (3 * H, H), jnp.float32, -k_gru, k_gru),
        "b_hh": jax.random.uniform(ks[3], (3 * H,), jnp.float32, -k_gru, k_gru),
        "w_proj": jax.random.uniform(ks[4], (H, proj_in), jnp.float32, -k_lin, k_lin),
        "b_proj": jax.random.uniform(ks[5], (H,), jnp.float32, -k_lin, k_lin),
    }


if __name__ == "__main__":
    B = 8
    T = 4
    enc_hidden_size = dec_hidden_size = 32  # must be equal (proj_out in-dim arithmetic)

    key = jax.random.PRNGKey(0)
    k_in, k_h, k_enc, k_param, k_seq = jax.random.split(key, 5)

    inp = jax.random.normal(k_in, (B, LABEL_DIM), jnp.float32)
    hidden = jax.random.normal(k_h, (B, dec_hidden_size), jnp.float32)
    encoder_outputs = jax.random.normal(k_enc, (B, enc_hidden_size), jnp.float32)
    params = init_params(k_param, enc_hidden_size, dec_hidden_size)

    # One-time parameter re-layout (hoisted out of the per-step path).
    prep = prepare_params(params, enc_hidden_size, dec_hidden_size)

    # --- single-step forward (the module's forward) ---
    pred, h_new = decoder_forward(inp, hidden, encoder_outputs, prep)
    jax.block_until_ready((pred, h_new))

    pred_ref, h_ref = _reference_forward(inp, hidden, encoder_outputs, params)
    # bf16 matmul operands (f32 accumulate) -> loosened tolerance vs f32 reference.
    assert jnp.allclose(pred, pred_ref, atol=7.5e-2, rtol=5e-2), \
        float(jnp.max(jnp.abs(pred - pred_ref)))
    assert jnp.allclose(h_new, h_ref, atol=7.5e-2, rtol=5e-2), \
        float(jnp.max(jnp.abs(h_new - h_ref)))

    # --- T-step teacher-forced decode inside one pallas_call ---
    inputs_seq = jax.random.normal(k_seq, (T, B, LABEL_DIM), jnp.float32)
    preds, h_T = decoder_decode(inputs_seq, hidden, encoder_outputs, prep)
    jax.block_until_ready((preds, h_T))

    h_r = hidden
    for t in range(T):
        p_r, h_r = _reference_forward(inputs_seq[t], h_r, encoder_outputs, params)
        assert jnp.allclose(preds[t], p_r, atol=7.5e-2, rtol=5e-2), \
            (t, float(jnp.max(jnp.abs(preds[t] - p_r))))
    assert jnp.allclose(h_T, h_r, atol=7.5e-2, rtol=5e-2), \
        float(jnp.max(jnp.abs(h_T - h_r)))

    print("KERNEL_OK")
</pallas_src>

<mosaic_0001>
module attributes {stable_mosaic.version = 11 : i64} {
  func.func @_decoder_loop_kernel(%arg0: i32, %arg1: memref<1x8x144xbf16, #tpu.memory_space<vmem>>, %arg2: memref<8x32xf32, #tpu.memory_space<vmem>>, %arg3: memref<144x128xbf16, #tpu.memory_space<vmem>>, %arg4: memref<32x128xbf16, #tpu.memory_space<vmem>>, %arg5: memref<32x32xbf16, #tpu.memory_space<vmem>>, %arg6: memref<1x128xf32, #tpu.memory_space<vmem>>, %arg7: memref<1x8x128xf32, #tpu.memory_space<vmem>>, %arg8: memref<8x32xf32, #tpu.memory_space<vmem>>, %arg9: memref<8x32xf32, #tpu.memory_space<vmem>>) attributes {dimension_semantics = [#tpu.dimension_semantics<arbitrary>], iteration_bounds = array<i64: 1>, scalar_prefetch = 0 : i64, scratch_operands = 1 : i64, tpu.core_type = #tpu.core_type<tc>, window_params = [{transform_indices = @transform_0, window_bounds = array<i64: 1, 8, 144>}, {pipeline_mode = #tpu.pipeline_mode<synchronous>, transform_indices = @transform_1, window_bounds = array<i64: 8, 32>}, {pipeline_mode = #tpu.pipeline_mode<synchronous>, transform_indices = @transform_2, window_bounds = array<i64: 144, 128>}, {pipeline_mode = #tpu.pipeline_mode<synchronous>, transform_indices = @transform_3, window_bounds = array<i64: 32, 128>}, {pipeline_mode = #tpu.pipeline_mode<synchronous>, transform_indices = @transform_4, window_bounds = array<i64: 32, 32>}, {pipeline_mode = #tpu.pipeline_mode<synchronous>, transform_indices = @transform_5, window_bounds = array<i64: 1, 128>}, {transform_indices = @transform_6, window_bounds = array<i64: 1, 8, 128>}, {pipeline_mode = #tpu.pipeline_mode<synchronous>, transform_indices = @transform_7, window_bounds = array<i64: 8, 32>}]} {
    %c0_i32 = arith.constant 0 : i32
    %0 = arith.cmpi eq, %arg0, %c0_i32 : i32
    %1 = arith.extui %0 : i1 to i32
    %c0_i32_0 = arith.constant 0 : i32
    %2 = arith.cmpi ne, %1, %c0_i32_0 : i32
    scf.if %2 {
      %c0_25 = arith.constant 0 : index
      %c0_26 = arith.constant 0 : index
      %50 = vector.load %arg2[%c0_25, %c0_26] : memref<8x32xf32, #tpu.memory_space<vmem>>, vector<8x32xf32>
      %c0_27 = arith.constant 0 : index
      %c0_28 = arith.constant 0 : index
      %51 = vector.load %arg9[%c0_27, %c0_28] : memref<8x32xf32, #tpu.memory_space<vmem>>, vector<8x32xf32>
      tpu.vector_store %arg9[%c0_27, %c0_28], %50 {strides = array<i32>} : memref<8x32xf32, #tpu.memory_space<vmem>>, vector<8x32xf32>,
    } else {
    }
    %c0 = arith.constant 0 : index
    %c0_1 = arith.constant 0 : index
    %c0_2 = arith.constant 0 : index
    %3 = vector.load %arg1[%c0, %c0_1, %c0_2] : memref<1x8x144xbf16, #tpu.memory_space<vmem>>, vector<1x8x144xbf16>
    %4 = vector.shape_cast %3 : vector<1x8x144xbf16> to vector<8x144xbf16>
    %c0_3 = arith.constant 0 : index
    %c0_4 = arith.constant 0 : index
    %5 = vector.load %arg9[%c0_3, %c0_4] : memref<8x32xf32, #tpu.memory_space<vmem>>, vector<8x32xf32>
    %c0_5 = arith.constant 0 : index
    %c0_6 = arith.constant 0 : index
    %6 = vector.load %arg3[%c0_5, %c0_6] : memref<144x128xbf16, #tpu.memory_space<vmem>>, vector<144x128xbf16>
    %cst = arith.constant dense<0.000000e+00> : vector<8x128xf32>
    %7 = tpu.matmul %4, %6, %cst {dimension_numbers = #tpu.dot_dimension_numbers<[1], [0], [0], [1], [0, 0, 1, 1], [], []>} : vector<8x144xbf16>, vector<144x128xbf16>, vector<8x128xf32> -> vector<8x128xf32>
    %8 = arith.truncf %5 : vector<8x32xf32> to vector<8x32xbf16>
    %c0_7 = arith.constant 0 : index
    %c0_8 = arith.constant 0 : index
    %9 = vector.load %arg4[%c0_7, %c0_8] : memref<32x128xbf16, #tpu.memory_space<vmem>>, vector<32x128xbf16>
    %cst_9 = arith.constant dense<0.000000e+00> : vector<8x128xf32>
    %10 = tpu.matmul %8, %9, %cst_9 {dimension_numbers = #tpu.dot_dimension_numbers<[1], [0], [0], [1], [0, 0, 1, 1], [], []>} : vector<8x32xbf16>, vector<32x128xbf16>, vector<8x128xf32> -> vector<8x128xf32>
    %c0_10 = arith.constant 0 : index
    %c0_11 = arith.constant 0 : index
    %11 = vector.load %arg6[%c0_10, %c0_11] : memref<1x128xf32, #tpu.memory_space<vmem>>, vector<1x128xf32>
    %12 = vector.broadcast %11 : vector<1x128xf32> to vector<8x128xf32>
    %13 = arith.addf %10, %12 : vector<8x128xf32>
    %14 = vector.extract_strided_slice %7 {offsets = [0, 0], sizes = [8, 32], strides = [1, 1]} : vector<8x128xf32> to vector<8x32xf32>
    %15 = vector.extract_strided_slice %13 {offsets = [0, 0], sizes = [8, 32], strides = [1, 1]} : vector<8x128xf32> to vector<8x32xf32>
    %16 = arith.addf %14, %15 : vector<8x32xf32>
    %17 = arith.negf %16 : vector<8x32xf32>
    %18 = math.exp %17 : vector<8x32xf32>
    %cst_12 = arith.constant 1.000000e+00 : f32
    %19 = vector.broadcast %cst_12 : f32 to vector<8x32xf32>
    %20 = arith.addf %19, %18 : vector<8x32xf32>
    %21 = arith.divf %19, %20 : vector<8x32xf32>
    %22 = vector.extract_strided_slice %7 {offsets = [0, 32], sizes = [8, 32], strides = [1, 1]} : vector<8x128xf32> to vector<8x32xf32>
    %23 = vector.extract_strided_slice %13 {offsets = [0, 32], sizes = [8, 32], strides = [1, 1]} : vector<8x128xf32> to vector<8x32xf32>
    %24 = arith.addf %22, %23 : vector<8x32xf32>
    %25 = arith.negf %24 : vector<8x32xf32>
    %26 = math.exp %25 : vector<8x32xf32>
    %cst_13 = arith.constant 1.000000e+00 : f32
    %27 = vector.broadcast %cst_13 : f32 to vector<8x32xf32>
    %28 = arith.addf %27, %26 : vector<8x32xf32>
    %29 = arith.divf %27, %28 : vector<8x32xf32>
    %30 = vector.extract_strided_slice %7 {offsets = [0, 64], sizes = [8, 32], strides = [1, 1]} : vector<8x128xf32> to vector<8x32xf32>
    %31 = vector.extract_strided_slice %13 {offsets = [0, 64], sizes = [8, 32], strides = [1, 1]} : vector<8x128xf32> to vector<8x32xf32>
    %32 = arith.mulf %21, %31 : vector<8x32xf32>
    %33 = arith.addf %30, %32 : vector<8x32xf32>
    %34 = math.tanh %33 : vector<8x32xf32>
    %cst_14 = arith.constant 1.000000e+00 : f32
    %35 = vector.broadcast %cst_14 : f32 to vector<8x32xf32>
    %36 = arith.subf %35, %29 : vector<8x32xf32>
    %37 = arith.mulf %36, %34 : vector<8x32xf32>
    %38 = arith.mulf %29, %5 : vector<8x32xf32>
    %39 = arith.addf %37, %38 : vector<8x32xf32>
    %40 = vector.extract_strided_slice %7 {offsets = [0, 96], sizes = [8, 32], strides = [1, 1]} : vector<8x128xf32> to vector<8x32xf32>
    %41 = arith.truncf %39 : vector<8x32xf32> to vector<8x32xbf16>
    %c0_15 = arith.constant 0 : index
    %c0_16 = arith.constant 0 : index
    %42 = vector.load %arg5[%c0_15, %c0_16] : memref<32x32xbf16, #tpu.memory_space<vmem>>, vector<32x32xbf16>
    %cst_17 = arith.constant dense<0.000000e+00> : vector<8x32xf32>
    %43 = tpu.matmul %41, %42, %cst_17 {dimension_numbers = #tpu.dot_dimension_numbers<[1], [0], [0], [1], [0, 0, 1, 1], [], []>} : vector<8x32xbf16>, vector<32x32xbf16>, vector<8x32xf32> -> vector<8x32xf32>
    %44 = arith.addf %40, %43 : vector<8x32xf32>
    %c0_18 = arith.constant 0 : index
    %c0_19 = arith.constant 0 : index
    %c0_20 = arith.constant 0 : index
    %45 = vector.load %arg7[%c0_18, %c0_19, %c0_20] : memref<1x8x128xf32, #tpu.memory_space<vmem>>, vector<1x8x32xf32>
    %46 = vector.shape_cast %45 : vector<1x8x32xf32> to vector<8x32xf32>
    %47 = vector.shape_cast %44 : vector<8x32xf32> to vector<1x8x32xf32>
    tpu.vector_store %arg7[%c0_18, %c0_19, %c0_20], %47 {strides = array<i32>} : memref<1x8x128xf32, #tpu.memory_space<vmem>>, vector<1x8x32xf32>,
    %c0_21 = arith.constant 0 : index
    %c0_22 = arith.constant 0 : index
    %48 = vector.load %arg9[%c0_21, %c0_22] : memref<8x32xf32, #tpu.memory_space<vmem>>, vector<8x32xf32>
    tpu.vector_store %arg9[%c0_21, %c0_22], %39 {strides = array<i32>} : memref<8x32xf32, #tpu.memory_space<vmem>>, vector<8x32xf32>,
    %c0_23 = arith.constant 0 : index
    %c0_24 = arith.constant 0 : index
    %49 = vector.load %arg8[%c0_23, %c0_24] : memref<8x32xf32, #tpu.memory_space<vmem>>, vector<8x32xf32>
    tpu.vector_store %arg8[%c0_23, %c0_24], %39 {strides = array<i32>} : memref<8x32xf32, #tpu.memory_space<vmem>>, vector<8x32xf32>,
    return
  }
  func.func @transform_0(%arg0: i32) -> (i32, i32, i32) {
    %c0_i32 = arith.constant 0 : i32
    %c0_i32_0 = arith.constant 0 : i32
    %c0_i32_1 = arith.constant 0 : i32
    return %arg0, %c0_i32, %c0_i32_0 : i32, i32, i32
  }
  func.func @transform_1(%arg0: i32) -> (i32, i32) {
    %c0_i32 = arith.constant 0 : i32
    %c0_i32_0 = arith.constant 0 : i32
    %c0_i32_1 = arith.constant 0 : i32
    return %c0_i32, %c0_i32_0 : i32, i32
  }
  func.func @transform_2(%arg0: i32) -> (i32, i32) {
    %c0_i32 = arith.constant 0 : i32
    %c0_i32_0 = arith.constant 0 : i32
    %c0_i32_1 = arith.constant 0 : i32
    return %c0_i32, %c0_i32_0 : i32, i32
  }
  func.func @transform_3(%arg0: i32) -> (i32, i32) {
    %c0_i32 = arith.constant 0 : i32
    %c0_i32_0 = arith.constant 0 : i32
    %c0_i32_1 = arith.constant 0 : i32
    return %c0_i32, %c0_i32_0 : i32, i32
  }
  func.func @transform_4(%arg0: i32) -> (i32, i32) {
    %c0_i32 = arith.constant 0 : i32
    %c0_i32_0 = arith.constant 0 : i32
    %c0_i32_1 = arith.constant 0 : i32
    return %c0_i32, %c0_i32_0 : i32, i32
  }
  func.func @transform_5(%arg0: i32) -> (i32, i32) {
    %c0_i32 = arith.constant 0 : i32
    %c0_i32_0 = arith.constant 0 : i32
    %c0_i32_1 = arith.constant 0 : i32
    return %c0_i32, %c0_i32_0 : i32, i32
  }
  func.func @transform_6(%arg0: i32) -> (i32, i32, i32) {
    %c0_i32 = arith.constant 0 : i32
    %c0_i32_0 = arith.constant 0 : i32
    %c0_i32_1 = arith.constant 0 : i32
    return %arg0, %c0_i32, %c0_i32_0 : i32, i32, i32
  }
  func.func @transform_7(%arg0: i32) -> (i32, i32) {
    %c0_i32 = arith.constant 0 : i32
    %c0_i32_0 = arith.constant 0 : i32
    %c0_i32_1 = arith.constant 0 : i32
    return %c0_i32, %c0_i32_0 : i32, i32
  }
}

</mosaic_0001>

<bundles_post_ra>
// kernel: tpu_custom_call.1
= control target key start
LH: loop header
LB: loop body
LE: loop exit
PB: predicated region body
PF: predicated region fallthrough
CT: control target
= control target key end

     0   :  { %13 = vsyncpa [#allocation4], 0  ;;  %s761_s0 = inlined_call_operand.hbm [shape: bf16[1,8,144], index: 0, kind: input, shape index: {}]   ;;  %s762_s1 = inlined_call_operand.hbm [shape: f32[8,32], index: 1, kind: input, shape index: {}]   ;;  %s763_s2 = inlined_call_operand.hbm [shape: bf16[144,128], index: 2, kind: input, shape index: {}]   ;;  %s764_s3 = inlined_call_operand.hbm [shape: bf16[32,128], index: 3, kind: input, shape index: {}]   ;;  %s765_s4 = inlined_call_operand.hbm [shape: bf16[32,32], index: 4, kind: input, shape index: {}]   ;;  %s766_s5 = inlined_call_operand.vmem [shape: f32[1,128], index: 5, kind: input, shape index: {}]   ;;  %s767_s6 = inlined_call_operand.hbm [shape: f32[1,8,128], index: 6, kind: output, shape index: {0}]   ;;  %s768_s7 = inlined_call_operand.hbm [shape: f32[8,32], index: 7, kind: output, shape index: {1}]  }
   0x1   :  { %14 = vsyncpa [#allocation7], 0 }
   0x2   :  { %15 = vsyncpa [#allocation10], 0 }
   0x3   :  { %16 = vsyncpa [#allocation5], 0 }
   0x4   :  { %17 = vsyncpa [#allocation14], 0  ;;  %s658_s24 = smov [#allocation6]  }
   0x5   :  { %s34_s25 = sshll.u32 %s658_s24, 4  ;;  %s35_s25 = int_to_ptr.vmem [resolvable:$true] %s34_s25 }
   0x6   :  { %s516_s26 = scalar_lea.vmem %s35_s25, 128  ;;  %p521_p1 = scmp.lt.s32.totalorder %s35_s25, %s35_s25 }
   0x7   :  { %p517_p0 = scmp.ne.s32.totalorder %s35_s25, %s516_s26  ;;  %p522_p2 = scmp.lt.s32.totalorder %s516_s26, %s516_s26 }
   0x9   :  { %p523_p3 = por %p522_p2, %p521_p1 }
   0xb   :  { %p524_p4 = pnand %p523_p3, %p517_p0 }
   0xd   :  { %527 = shalt.err (!%p524_p4)
}
   0xe   :  { %37 = dma.hbm_to_vmem [thread:$0]  %s762_s1, 128, %s35_s25, [#allocation7]  }
   0xf   :  { %s659_s29 = smov [#allocation9]   ;;  %s660_s8 = smov [#allocation3]  }
  0x10   :  { %s55_s30 = sshll.u32 %s659_s29, 4  ;;  %s24_s9 = sshll.u32 %s660_s8, 4  ;;  %s56_s30 = int_to_ptr.vmem [resolvable:$true] %s55_s30  ;;  %s25_s9 = int_to_ptr.vmem [resolvable:$true] %s24_s9 }
  0x11   :  { %s536_s10 = scalar_lea.vmem %s56_s30, 256  ;;  %p541_p6 = scmp.lt.s32.totalorder %s56_s30, %s56_s30 }
  0x12   :  { %p537_p5 = scmp.ne.s32.totalorder %s56_s30, %s536_s10  ;;  %p542_p7 = scmp.lt.s32.totalorder %s536_s10, %s536_s10 }
  0x14   :  { %p543_p8 = por %p542_p7, %p541_p6 }
  0x16   :  { %p544_p9 = pnand %p543_p8, %p537_p5 }
  0x18   :  { %547 = shalt.err (!%p544_p9)
}
  0x19   :  { %s661_s11 = smov 64   ;;  %s662_s12 = smov 4  }
  0x1a   :  { %61 = dma.hbm_to_vmem [thread:$0]  %s764_s3, 256, %s56_s30, [#allocation10], %s661_s11, %s661_s11, %s662_s12  }
  0x1b   :  { %s556_s1 = scalar_lea.vmem %s25_s9, 128  ;;  %p561_p11 = scmp.lt.s32.totalorder %s25_s9, %s25_s9 }
  0x1c   :  { %p557_p10 = scmp.ne.s32.totalorder %s25_s9, %s556_s1  ;;  %p562_p12 = scmp.lt.s32.totalorder %s556_s1, %s556_s1 }
  0x1e   :  { %p563_p13 = por %p562_p12, %p561_p11 }
  0x20   :  { %p564_p0 = pnand %p563_p13, %p557_p10 }
  0x22   :  { %567 = shalt.err (!%p564_p0)
}
  0x23   :  { %27 = dma.hbm_to_vmem [thread:$0]  %s761_s0, 128, %s25_s9, [#allocation4]  }
  0x24   :  { %s663_s17 = smov [#allocation8]   ;;  %s664_s19 = smov [#allocation11]  }
  0x25   :  { %s43_s18 = sshll.u32 %s663_s17, 4  ;;  %s67_s20 = sshll.u32 %s664_s19, 4  ;;  %s44_s18 = int_to_ptr.vmem [resolvable:$true] %s43_s18  ;;  %s68_s20 = int_to_ptr.vmem [resolvable:$true] %s67_s20 }
  0x26   :  { %s576_s21 = scalar_lea.vmem %s44_s18, 1152  ;;  %p581_p2 = scmp.lt.s32.totalorder %s44_s18, %s44_s18 }
  0x27   :  { %p577_p1 = scmp.ne.s32.totalorder %s44_s18, %s576_s21  ;;  %p582_p3 = scmp.lt.s32.totalorder %s576_s21, %s576_s21 }
  0x29   :  { %p583_p4 = por %p582_p3, %p581_p2 }
  0x2b   :  { %p584_p5 = pnand %p583_p4, %p577_p1 }
  0x2d   :  { %587 = shalt.err (!%p584_p5)
}
  0x2e   :  { %49 = dma.hbm_to_vmem [thread:$0]  %s763_s2, 1152, %s44_s18, [#allocation7], %s661_s11, %s661_s11, %s662_s12  }
  0x2f   :  { %s596_s0 = scalar_lea.vmem %s68_s20, 256  ;;  %p601_p7 = scmp.lt.s32.totalorder %s68_s20, %s68_s20 }
  0x30   :  { %p597_p6 = scmp.ne.s32.totalorder %s68_s20, %s596_s0  ;;  %p602_p8 = scmp.lt.s32.totalorder %s596_s0, %s596_s0 }
  0x32   :  { %p603_p9 = por %p602_p8, %p601_p7 }
  0x34   :  { %p604_p10 = pnand %p603_p9, %p597_p6 }
  0x36   :  { %607 = shalt.err (!%p604_p10)
}
  0x37   :  { %73 = dma.hbm_to_vmem [thread:$0]  %s765_s4, 256, %s68_s20, [#allocation10], %s661_s11, %s661_s11, %s662_s12  }
  0x38   :  { %648 = dma.done.wait [#allocation4], 128  }
  0x39   :  { %649 = vsyncadd [#allocation4], 4294967168 }
  0x3a   :  { %650 = dma.done.wait [#allocation7], 1280  }
  0x3b   :  { %651 = vsyncadd [#allocation7], 4294966016 }
  0x3c   :  { %652 = dma.done.wait [#allocation10], 512  }
  0x3d   :  { %653 = vsyncadd [#allocation10], 4294966784  ;;  %v665_v0 = vmov 0   ;;  %v666_v1 = vmov 0.0   ;;  %vm667_vm0 = vmmov 0   ;;  %v487_v2 = vld [vmem:[#allocation8 + $0x38] sm:$0xff]  }
  0x3e   :  { %183 = vmatprep.subr.bf16.mxu0 %v665_v0  ;;  %457 = vmatprep.subr.bf16.mxu1 %v666_v1  ;;  %v488_v3 = vld [vmem:[#allocation9 + $0x8] sm:$0xff]   ;;  %v490_v5 = vld [vmem:[#allocation9] sm:$0xff]   ;;  %vm97_vm1 = vcmask 261120   ;;  %v96_v6 = vld [vmem:[#allocation6] sm:$0xff]  ;;  %vm179_vm2 = vcmask 130048   ;;  %s669_s25 = smov 32  }
  0x3f   :  { %461 = vmatprep.mubr.msk.bf16.mxu1 %vm667_vm0, %v666_v1  ;;  %184 = vmatpush1.bf16.msra.mxu0 %v487_v2  ;;  %v489_v4 = vld [vmem:[#allocation8 + $0x30] sm:$0xff]   ;;  %v491_v7 = vld [vmem:[#allocation8 + $0x28] sm:$0xff]   ;;  %98 = vst.msk [vmem:[#allocation2] sm:$0xff] %vm97_vm1, %v96_v6  ;;  %v492_v8 = vld [vmem:[#allocation8 + $0x20] sm:$0xff]   ;;  %s670_s26 = smov [#allocation13]  }
  0x40   :  { %458 = vmatpush3.bf16.msra.mxu1 %v488_v3  ;;  %185 = vmatprep.subr.bf16.mxu0 %v665_v0  ;;  %v99_v9 = vld [vmem:[#allocation3] sm:$0xff]  ;;  %v493_v13 = vld [vmem:[#allocation8 + $0x18] sm:$0xff]   ;;  %v495_v15 = vld [vmem:[#allocation8 + $0x8] sm:$0xff]   ;;  %s416_s27 = sshll.u32 %s670_s26, 4  ;;  %s417_s27 = int_to_ptr.vmem [resolvable:$true] %s416_s27 }
  0x41   :  { %459 = vmatprep.subr.bf16.mxu1 %v666_v1  ;;  %v432_v10 = vcombine.high %v99_v9, %v99_v9  ;;  %v494_v14 = vld [vmem:[#allocation8 + $0x10] sm:$0xff]   ;;  %v496_v16 = vld [vmem:[#allocation8] sm:$0xff]   ;;  %v431_v18 = vcombine.low %v99_v9, %v99_v9  ;;  %v443_v19 = vld [vmem:[%s766_s5] ss:$0 sm:$0xff]  ;;  %s668_s5 = smov 96   ;;  %s608_s28 = scalar_lea.vmem %s417_s27, 128 }
  0x42   :  { %v497_v17 = vld [vmem:[#allocation8 + $0x40] sm:$0xff]   ;;  %v501_v40 = vld [vmem:[#allocation11] sm:$0xff]   ;;  %p609_p11 = scmp.ne.s32.totalorder %s417_s27, %s608_s28  ;;  %p613_p12 = scmp.lt.s32.totalorder %s417_s27, %s417_s27 }
  0x43   :  { %186 = vmatpush1.bf16.msra.mxu0 %v489_v4  ;;  %442 = vmatprep.mubr.msk.bf16.mxu0 %vm179_vm2, %v432_v10  ;;  %v500_v38 = vld [vmem:[#allocation11 + $0x8] sm:$0xff]   ;;  %p614_p13 = scmp.lt.s32.totalorder %s608_s28, %s608_s28 }
  0x44   :  { %460 = vmatpush3.bf16.msra.mxu1 %v490_v5  ;;  %187 = vmatprep.subr.bf16.mxu0 %v665_v0 }
  0x45   :  { %465 = vmatprep.subr.bf16.mxu1 %v666_v1  ;;  %p615_p0 = por %p614_p13, %p613_p12 }
  0x46   :  { %v100_v11 = vld [vmem:[#allocation2] sm:$0xff] }
  0x47   :  { %188 = vmatpush1.bf16.msra.mxu0 %v491_v7  ;;  %v223_v12 = vpack.c.bf16 %v100_v11, %v100_v11  ;;  %p616_p1 = pnand %p615_p0, %p609_p11 }
  0x48   :  { %189 = vmatprep.subr.bf16.mxu0 %v665_v0 }
  0x49   :  { %462 = vmatmul.mubr.msk.bf16.vlgmr.msra.gmra.mxu1 %vm97_vm1, %v223_v12 }
  0x4a   :  { %469 = vmatprep.mubr.msk.bf16.mxu1 %vm667_vm0, %v666_v1  ;;  %466 = vmatpush3.bf16.msra.mxu1 %v500_v38 }
  0x4b   :  { %190 = vmatpush1.bf16.msra.mxu0 %v492_v8  ;;  %467 = vmatprep.subr.bf16.mxu1 %v666_v1 }
  0x4c   :  { %191 = vmatprep.subr.bf16.mxu0 %v665_v0 }
  0x4e   :  { %468 = vmatpush3.bf16.msra.mxu1 %v501_v40 }
  0x4f   :  { %192 = vmatpush1.bf16.msra.mxu0 %v493_v13 }
  0x50   :  { %193 = vmatprep.subr.bf16.mxu0 %v665_v0 }
  0x53   :  { %194 = vmatpush1.bf16.msra.mxu0 %v494_v14 }
  0x54   :  { %195 = vmatprep.subr.bf16.mxu0 %v665_v0 }
  0x57   :  { %196 = vmatpush1.bf16.msra.mxu0 %v495_v15 }
  0x58   :  { %197 = vmatprep.subr.bf16.mxu0 %v665_v0 }
  0x5b   :  { %198 = vmatpush1.bf16.msra.mxu0 %v496_v16 }
  0x5c   :  { %213 = vmatprep.subr.bf16.mxu0 %v665_v0 }
  0x5f   :  { %214 = vmatpush2.bf16.msra.mxu0 %v497_v17 }
  0x62   :  { %216 = vmatmul.mubr.bf16.vlgmr.msra.gmra.mxu0 %v431_v18 }
 0x109   :  { %v285_v20 = vpop.f32.mrf.mxu1 }
 0x10a   :  { %v286_v21 = vadd.f32 %v443_v19, %v285_v20 }
 0x10b   :  { %v463_v22 = vpop.f32.mrf.mxu1 }
 0x10c   :  { %299 = vrot.lane.b32.xlu0 %v286_v21, %s661_s11 }
 0x10d   :  { %v288_v23 = vpop.f32.mrf.mxu1 }
 0x10f   :  { %v464_v24 = vpop.f32.mrf.mxu1 }
 0x122   :  { %v217_v25 = vpop.f32.mrf.mxu0 }
 0x123   :  { %v291_v29 = vadd.f32 %v286_v21, %v217_v25 }
 0x124   :  { %v219_v26 = vpop.f32.mrf.mxu0 }
 0x125   :  { %v447_v30 = vmul.f32 -1.442695, %v291_v29 }
 0x126   :  { %v220_v27 = vpop.f32.mrf.mxu0 }
 0x127   :  { %502 = vpow2.f32 %v447_v30 }
 0x128   :  { %v221_v28 = vpop.f32.mrf.mxu0 }
 0x134   :  { %v503_v31 = vpop.eup %502 }
 0x135   :  { %v295_v32 = vadd.f32 1.0, %v503_v31 }
 0x137   :  { %504 = vrcp.f32 %v295_v32 }
 0x144   :  { %v505_v33 = vpop.eup %504 }
 0x145   :  { %v309_v42 = vsub.f32 1.0, %v505_v33 }
 0x17e   :  { %v300_v34 = vpop.permute.xlu0 %299 }
 0x17f   :  { %v302_v35 = vmul.f32 %v505_v33, %v300_v34 }
 0x181   :  { %304 = vrot.lane.b32.xlu0 %v302_v35, %s661_s11 }
 0x1f3   :  { %v305_v36 = vpop.permute.xlu0 %304 }
 0x1f4   :  { %v307_v37 = vadd.f32 %v305_v36, %v217_v25 }
 0x1f6   :  { %506 = vtanh.f32 %v307_v37 }
 0x203   :  { %v507_v39 = vpop.eup %506 }
 0x204   :  { %311 = vrot.lane.b32.xlu1 %v507_v39, %s668_s5 }
 0x208   :  { %316 = vrot.lane.b32.xlu1 %v100_v11, %s669_s25 }
 0x276   :  { %v312_v41 = vpop.permute.xlu1 %311 }
 0x277   :  { %v314_v44 = vmul.f32 %v312_v41, %v309_v42 }
 0x27a   :  { %v317_v43 = vpop.permute.xlu1 %316 }
 0x27b   :  { %v319_v45 = vmul.f32 %v505_v33, %v317_v43 }
 0x27d   :  { %v320_v46 = vadd.f32 %v319_v45, %v314_v44 }
 0x27f   :  { %v321_v47 = vpack.c.bf16 %v320_v46, %v320_v46 }
 0x281   :  { %327 = vrot.lane.b32.xlu0 %v321_v47, %s668_s5 }
 0x2f3   :  { %v328_v48 = vpop.permute.xlu0 %327 }
 0x2f4   :  { %470 = vmatmul.mubr.msk.bf16.vlgmr.msra.gmra.mxu1 %vm97_vm1, %v328_v48 }
 0x3b4   :  { %v378_v49 = vpop.f32.mrf.mxu1 }
 0x3b5   :  { %385 = vrot.lane.b32.xlu1 %v378_v49, %s668_s5 }
 0x3b6   :  { %v471_v50 = vpop.f32.mrf.mxu1 }
 0x3b8   :  { %v381_v51 = vpop.f32.mrf.mxu1 }
 0x3b9   :  { %395 = vrot.lane.b32.xlu1 %v320_v46, %s668_s5 }
 0x3ba   :  { %v472_v52 = vpop.f32.mrf.mxu1 }
 0x427   :  { %v386_v53 = vpop.permute.xlu1 %385 }
 0x428   :  { %v388_v54 = vadd.f32 %v386_v53, %v217_v25 }
 0x42a   :  { %390 = vrot.lane.b32.xlu0 %v388_v54, %s669_s25 }
 0x42b   :  { %v396_v55 = vpop.permute.xlu1 %395 }
 0x42c   :  { %398 = vst.msk [vmem:[#allocation2] sm:$0xff] %vm97_vm1, %v396_v55  ;;  %399 = vst.msk [vmem:[#allocation13] sm:$0xff] %vm97_vm1, %v396_v55 }
 0x42d   :  { %619 = shalt.err (!%p616_p1)
}
 0x42e   :  { %419 = dma.vmem_to_hbm [thread:$0]  %s417_s27, 128, %s768_s7, [#allocation14]  }
 0x42f   :  { %s671_s8 = smov [#allocation12]  }
 0x430   :  { %s406_s9 = sshll.u32 %s671_s8, 4  ;;  %s407_s9 = int_to_ptr.vmem [resolvable:$true] %s406_s9 }
 0x431   :  { %s628_s10 = scalar_lea.vmem %s407_s9, 128  ;;  %p633_p3 = scmp.lt.s32.totalorder %s407_s9, %s407_s9 }
 0x432   :  { %p629_p2 = scmp.ne.s32.totalorder %s407_s9, %s628_s10  ;;  %p634_p4 = scmp.lt.s32.totalorder %s628_s10, %s628_s10 }
 0x434   :  { %p635_p5 = por %p634_p4, %p633_p3 }
 0x436   :  { %p636_p6 = pnand %p635_p5, %p629_p2 }
 0x49c   :  { %v391_v56 = vpop.permute.xlu0 %390 }
 0x49d   :  { %393 = vst.msk [vmem:[#allocation12] sm:$0xff] %vm97_vm1, %v391_v56 }
 0x49e   :  { %639 = shalt.err (!%p636_p6)
}
 0x49f   :  { %409 = dma.vmem_to_hbm [thread:$0]  %s407_s9, 128, %s767_s6, [#allocation5]  }
 0x4a0   :  { %654 = dma.done.wait [#allocation5], 128  }
 0x4a1   :  { %655 = vsyncadd [#allocation5], 4294967168 }
 0x4a2   :  { %656 = dma.done.wait [#allocation14], 128  }
 0x4a3   :  { %657 = vsyncadd [#allocation14], 4294967168 }
 0x4a4   :  { %426 = vsyncpa [#allocation4], 1 }
 0x4a5   :  { %427 = vsyncpa [#allocation7], 1 }
 0x4a6   :  { %428 = vsyncpa [#allocation10], 1 }
 0x4a7   :  { %429 = vsyncpa [#allocation5], 1 }
 0x4a8   :  { %430 = vsyncpa [#allocation14], 1 }

</bundles_post_ra>
